<compile_context>
chip_gen: v7x
topology: tpu7x:2x2x1
jax: 0.10.0
libtpu: 0.0.40
codegen_flags: <defaults>
</compile_context>

<pallas_src>
import jax
import jax.numpy as jnp
from jax.experimental import pallas as pl
from jax.experimental.pallas import tpu as pltpu


def _round_up(x, m):
    return (x + m - 1) // m * m


# --------------------------------------------------------------------------
# Pass 1: conv-as-GEMM + per-channel sum / sum-of-squares accumulation.
#   p_ref   : [tile_m, K_pad]   im2col patch tile
#   w_ref   : [K_pad, C_pad]    flattened conv weight (resident)
#   sum_ref : [1, C_pad]        running per-channel sum   (accumulator output)
#   sq_ref  : [1, C_pad]        running per-channel sumsq (accumulator output)
# --------------------------------------------------------------------------
def _stats_kernel(p_ref, w_ref, sum_ref, sq_ref):
    @pl.when(pl.program_id(0) == 0)
    def _():
        sum_ref[...] = jnp.zeros_like(sum_ref)
        sq_ref[...] = jnp.zeros_like(sq_ref)

    y = jnp.dot(p_ref[...], w_ref[...], preferred_element_type=jnp.float32)
    sum_ref[...] += jnp.sum(y, axis=0, keepdims=True)
    sq_ref[...] += jnp.sum(y * y, axis=0, keepdims=True)


# --------------------------------------------------------------------------
# Pass 2: conv-as-GEMM + fused BatchNorm (pre-folded scale/bias FMA) + ReLU.
#   p_ref, w_ref as above; scale_ref/bias_ref: [1, C_pad]; o_ref: [tile_m, C_pad]
# --------------------------------------------------------------------------
def _norm_kernel(p_ref, w_ref, scale_ref, bias_ref, o_ref):
    y = jnp.dot(p_ref[...], w_ref[...], preferred_element_type=jnp.float32)
    y = y * scale_ref[...] + bias_ref[...]
    o_ref[...] = jnp.maximum(y, 0.0).astype(o_ref.dtype)


def _im2col(x_pad, H, W, kt, kh, kw):
    """x_pad: [N, T, H+2ph, W+2pw, Cin] -> patches [N*H*W, kt*kh*kw*Cin].

    Cin is kept as the innermost factor of K (lane-friendly ordering)."""
    N = x_pad.shape[0]
    Cin = x_pad.shape[-1]
    cols = []
    for t in range(kt):
        for dh in range(kh):
            for dw in range(kw):
                cols.append(x_pad[:, t, dh:dh + H, dw:dw + W, :])  # [N,H,W,Cin]
    patches = jnp.stack(cols, axis=3)                # [N, H, W, kt*kh*kw, Cin]
    return patches.reshape(N * H * W, kt * kh * kw * Cin)


def tst_block(x, weight, gamma, beta, eps=1e-5, *,
              compute_dtype=jnp.bfloat16, tile_m=256):
    """Forward pass of TSTBlock.

    x      : [N, C_in, T=2, H, W]   (PyTorch NCDHW)
    weight : [C_out, C_in, 2, k, k] (PyTorch Conv3d weight, bias=False)
    gamma  : [C_out]  BN weight
    beta   : [C_out]  BN bias
    returns: [N, C_out, H, W]       (PyTorch NCHW)
    """
    N, Cin, T, H, W = x.shape
    Cout, Cin_w, kt, kh, kw = weight.shape
    assert Cin == Cin_w and T == kt == 2, "TSTBlock expects time dim == 2"
    ph, pw = kh // 2, kw // 2

    # ---- glue: layout transforms / padding / im2col (plain JAX) ----
    x_l = jnp.transpose(x, (0, 2, 3, 4, 1))                    # [N,T,H,W,Cin]
    x_sp = jnp.pad(x_l, ((0, 0), (0, 0), (ph, ph), (pw, pw), (0, 0)))
    patches = _im2col(x_sp, H, W, kt, kh, kw)                  # [M, K]
    M, K = patches.shape

    # TPU-friendly zero padding: lane-dense K and Cout, sublane-aligned M.
    K_pad = _round_up(K, 128)
    C_pad = _round_up(Cout, 128)
    M_pad = _round_up(max(M, 8), 8)
    if M_pad > tile_m:
        M_pad = _round_up(M, tile_m)
        tm = tile_m
    else:
        tm = M_pad
    num_tiles = M_pad // tm

    patches_p = jnp.pad(patches, ((0, M_pad - M), (0, K_pad - K)))
    patches_p = patches_p.astype(compute_dtype)
    w2 = jnp.transpose(weight, (2, 3, 4, 1, 0)).reshape(K, Cout)
    w2 = jnp.pad(w2, ((0, K_pad - K), (0, C_pad - Cout))).astype(compute_dtype)
    gamma_p = jnp.pad(gamma.astype(jnp.float32), (0, C_pad - Cout)).reshape(1, C_pad)
    beta_p = jnp.pad(beta.astype(jnp.float32), (0, C_pad - Cout)).reshape(1, C_pad)

    vmem_limit = 32 * 1024 * 1024  # safe on v5e/v6e/v7x; tiles are far smaller

    # ---- pass 1: global BN batch statistics (accumulated across M tiles) ----
    col_sum, col_sq = pl.pallas_call(
        _stats_kernel,
        out_shape=(
            jax.ShapeDtypeStruct((1, C_pad), jnp.float32),
            jax.ShapeDtypeStruct((1, C_pad), jnp.float32),
        ),
        grid=(num_tiles,),
        in_specs=[
            pl.BlockSpec((tm, K_pad), lambda i: (i, 0)),
            pl.BlockSpec((K_pad, C_pad), lambda i: (0, 0)),
        ],
        out_specs=(
            pl.BlockSpec((1, C_pad), lambda i: (0, 0)),
            pl.BlockSpec((1, C_pad), lambda i: (0, 0)),
        ),
        compiler_params=pltpu.CompilerParams(
            dimension_semantics=("arbitrary",),   # accumulator over M tiles
            vmem_limit_bytes=vmem_limit,
        ),
    )(patches_p, w2)

    # Fold BN into a per-channel scale/bias (tiny [1, C_pad] math; plain JAX).
    # Padded rows contribute exactly 0 to sum/sumsq, so divide by the real M.
    m_real = jnp.float32(M)
    mean = col_sum / m_real
    var = jnp.maximum(col_sq / m_real - mean * mean, 0.0)   # biased variance
    inv = jax.lax.rsqrt(var + jnp.float32(eps))
    scale = gamma_p * inv                                   # padded ch: 0
    bias = beta_p - mean * scale                            # padded ch: 0

    # ---- pass 2: GEMM + fused BN FMA + ReLU (lane-dense output) ----
    out2d = pl.pallas_call(
        _norm_kernel,
        out_shape=jax.ShapeDtypeStruct((M_pad, C_pad), jnp.float32),
        grid=(num_tiles,),
        in_specs=[
            pl.BlockSpec((tm, K_pad), lambda i: (i, 0)),
            pl.BlockSpec((K_pad, C_pad), lambda i: (0, 0)),
            pl.BlockSpec((1, C_pad), lambda i: (0, 0)),
            pl.BlockSpec((1, C_pad), lambda i: (0, 0)),
        ],
        out_specs=pl.BlockSpec((tm, C_pad), lambda i: (i, 0)),
        compiler_params=pltpu.CompilerParams(
            dimension_semantics=("parallel",),    # independent M tiles (megacore)
            vmem_limit_bytes=vmem_limit,
        ),
    )(patches_p, w2, scale, bias)

    out = out2d[:M, :Cout].reshape(N, H, W, Cout)
    return jnp.transpose(out, (0, 3, 1, 2))                  # NCHW


def _reference(x, weight, gamma, beta, eps=1e-5):
    """Independent pure-JAX reference mirroring the PyTorch module (f32)."""
    y = jax.lax.conv_general_dilated(
        x, weight,
        window_strides=(1, 1, 1),
        padding=[(0, 0), (1, 1), (1, 1)],
        dimension_numbers=("NCDHW", "OIDHW", "NCDHW"),
    )                                                    # [N, Cout, 1, H, W]
    y = jnp.squeeze(y, axis=2)                           # Squeeze2
    mean = jnp.mean(y, axis=(0, 2, 3), keepdims=True)    # BatchNorm2d (train)
    var = jnp.mean((y - mean) ** 2, axis=(0, 2, 3), keepdims=True)
    yn = (y - mean) * jax.lax.rsqrt(var + eps)
    yn = yn * gamma.reshape(1, -1, 1, 1) + beta.reshape(1, -1, 1, 1)
    return jnp.maximum(yn, 0.0)                          # ReLU


if __name__ == "__main__":
    key = jax.random.PRNGKey(0)
    k1, k2, k3, k4 = jax.random.split(key, 4)

    N, Cin, Cout, T, H, W, ks = 2, 4, 8, 2, 16, 16, 3

    x = jax.random.normal(k1, (N, Cin, T, H, W), jnp.float32)
    fan_in = Cin * T * ks * ks
    weight = jax.random.normal(k2, (Cout, Cin, T, ks, ks), jnp.float32) / jnp.sqrt(
        jnp.float32(fan_in)
    )
    gamma = 1.0 + 0.1 * jax.random.normal(k3, (Cout,), jnp.float32)
    beta = 0.1 * jax.random.normal(k4, (Cout,), jnp.float32)

    ref = _reference(x, weight, gamma, beta)

    # Default (performance) path: bf16 into the MXU, f32 accumulation.
    out = jax.block_until_ready(tst_block(x, weight, gamma, beta))
    assert out.shape == (N, Cout, H, W), out.shape
    err_bf16 = float(jnp.max(jnp.abs(out - ref)))
    assert jnp.allclose(out, ref, atol=5e-2, rtol=5e-2), f"bf16 max_err={err_bf16}"

    # f32 path: tight numerical check of the kernel math itself.
    out_f32 = jax.block_until_ready(
        tst_block(x, weight, gamma, beta, compute_dtype=jnp.float32)
    )
    err_f32 = float(jnp.max(jnp.abs(out_f32 - ref)))
    assert jnp.allclose(out_f32, ref, atol=2e-3, rtol=2e-3), f"f32 max_err={err_f32}"

    print("KERNEL_OK")
</pallas_src>

<mosaic_0001>
module attributes {stable_mosaic.version = 11 : i64} {
  func.func @_stats_kernel(%arg0: i32, %arg1: memref<256x128xbf16, #tpu.memory_space<vmem>>, %arg2: memref<128x128xbf16, #tpu.memory_space<vmem>>, %arg3: memref<1x128xf32, #tpu.memory_space<vmem>>, %arg4: memref<1x128xf32, #tpu.memory_space<vmem>>) attributes {dimension_semantics = [#tpu.dimension_semantics<arbitrary>], iteration_bounds = array<i64: 2>, scalar_prefetch = 0 : i64, scratch_operands = 0 : i64, tpu.core_type = #tpu.core_type<tc>, window_params = [{transform_indices = @transform_0, window_bounds = array<i64: 256, 128>}, {pipeline_mode = #tpu.pipeline_mode<synchronous>, transform_indices = @transform_1, window_bounds = array<i64: 128, 128>}, {pipeline_mode = #tpu.pipeline_mode<synchronous>, transform_indices = @transform_2, window_bounds = array<i64: 1, 128>}, {pipeline_mode = #tpu.pipeline_mode<synchronous>, transform_indices = @transform_3, window_bounds = array<i64: 1, 128>}]} {
    %c0_i32 = arith.constant 0 : i32
    %0 = arith.cmpi eq, %arg0, %c0_i32 : i32
    %1 = arith.extui %0 : i1 to i32
    %c0_i32_0 = arith.constant 0 : i32
    %2 = arith.cmpi ne, %1, %c0_i32_0 : i32
    scf.if %2 {
      %cst_14 = arith.constant 0.000000e+00 : f32
      %17 = vector.broadcast %cst_14 : f32 to vector<1x128xf32>
      %c0_15 = arith.constant 0 : index
      %c0_16 = arith.constant 0 : index
      %18 = vector.load %arg3[%c0_15, %c0_16] : memref<1x128xf32, #tpu.memory_space<vmem>>, vector<1x128xf32>
      tpu.vector_store %arg3[%c0_15, %c0_16], %17 {strides = array<i32>} : memref<1x128xf32, #tpu.memory_space<vmem>>, vector<1x128xf32>,
      %cst_17 = arith.constant 0.000000e+00 : f32
      %19 = vector.broadcast %cst_17 : f32 to vector<1x128xf32>
      %c0_18 = arith.constant 0 : index
      %c0_19 = arith.constant 0 : index
      %20 = vector.load %arg4[%c0_18, %c0_19] : memref<1x128xf32, #tpu.memory_space<vmem>>, vector<1x128xf32>
      tpu.vector_store %arg4[%c0_18, %c0_19], %19 {strides = array<i32>} : memref<1x128xf32, #tpu.memory_space<vmem>>, vector<1x128xf32>,
    } else {
    }
    %c0 = arith.constant 0 : index
    %c0_1 = arith.constant 0 : index
    %3 = vector.load %arg1[%c0, %c0_1] : memref<256x128xbf16, #tpu.memory_space<vmem>>, vector<256x128xbf16>
    %c0_2 = arith.constant 0 : index
    %c0_3 = arith.constant 0 : index
    %4 = vector.load %arg2[%c0_2, %c0_3] : memref<128x128xbf16, #tpu.memory_space<vmem>>, vector<128x128xbf16>
    %cst = arith.constant dense<0.000000e+00> : vector<256x128xf32>
    %5 = tpu.matmul %3, %4, %cst {dimension_numbers = #tpu.dot_dimension_numbers<[1], [0], [0], [1], [0, 0, 1, 1], [], []>} : vector<256x128xbf16>, vector<128x128xbf16>, vector<256x128xf32> -> vector<256x128xf32>
    %c0_4 = arith.constant 0 : index
    %c0_5 = arith.constant 0 : index
    %6 = vector.load %arg3[%c0_4, %c0_5] : memref<1x128xf32, #tpu.memory_space<vmem>>, vector<1x128xf32>
    %cst_6 = arith.constant dense<0.000000e+00> : vector<128xf32>
    %7 = vector.multi_reduction <add>, %5, %cst_6 [0] : vector<256x128xf32> to vector<128xf32>
    %8 = vector.shape_cast %7 : vector<128xf32> to vector<1x128xf32>
    %9 = arith.addf %6, %8 : vector<1x128xf32>
    %c0_7 = arith.constant 0 : index
    %c0_8 = arith.constant 0 : index
    %10 = vector.load %arg3[%c0_7, %c0_8] : memref<1x128xf32, #tpu.memory_space<vmem>>, vector<1x128xf32>
    tpu.vector_store %arg3[%c0_7, %c0_8], %9 {strides = array<i32>} : memref<1x128xf32, #tpu.memory_space<vmem>>, vector<1x128xf32>,
    %c0_9 = arith.constant 0 : index
    %c0_10 = arith.constant 0 : index
    %11 = vector.load %arg4[%c0_9, %c0_10] : memref<1x128xf32, #tpu.memory_space<vmem>>, vector<1x128xf32>
    %12 = arith.mulf %5, %5 : vector<256x128xf32>
    %cst_11 = arith.constant dense<0.000000e+00> : vector<128xf32>
    %13 = vector.multi_reduction <add>, %12, %cst_11 [0] : vector<256x128xf32> to vector<128xf32>
    %14 = vector.shape_cast %13 : vector<128xf32> to vector<1x128xf32>
    %15 = arith.addf %11, %14 : vector<1x128xf32>
    %c0_12 = arith.constant 0 : index
    %c0_13 = arith.constant 0 : index
    %16 = vector.load %arg4[%c0_12, %c0_13] : memref<1x128xf32, #tpu.memory_space<vmem>>, vector<1x128xf32>
    tpu.vector_store %arg4[%c0_12, %c0_13], %15 {strides = array<i32>} : memref<1x128xf32, #tpu.memory_space<vmem>>, vector<1x128xf32>,
    return
  }
  func.func @transform_0(%arg0: i32) -> (i32, i32) {
    %c0_i32 = arith.constant 0 : i32
    %c0_i32_0 = arith.constant 0 : i32
    return %arg0, %c0_i32 : i32, i32
  }
  func.func @transform_1(%arg0: i32) -> (i32, i32) {
    %c0_i32 = arith.constant 0 : i32
    %c0_i32_0 = arith.constant 0 : i32
    %c0_i32_1 = arith.constant 0 : i32
    return %c0_i32, %c0_i32_0 : i32, i32
  }
  func.func @transform_2(%arg0: i32) -> (i32, i32) {
    %c0_i32 = arith.constant 0 : i32
    %c0_i32_0 = arith.constant 0 : i32
    %c0_i32_1 = arith.constant 0 : i32
    return %c0_i32, %c0_i32_0 : i32, i32
  }
  func.func @transform_3(%arg0: i32) -> (i32, i32) {
    %c0_i32 = arith.constant 0 : i32
    %c0_i32_0 = arith.constant 0 : i32
    %c0_i32_1 = arith.constant 0 : i32
    return %c0_i32, %c0_i32_0 : i32, i32
  }
}

</mosaic_0001>

<bundles_post_ra>
// kernel: tpu_custom_call.1
= control target key start
LH: loop header
LB: loop body
LE: loop exit
PB: predicated region body
PF: predicated region fallthrough
CT: control target
= control target key end

     0   :  { %9 = vsyncpa [#allocation3], 0  ;;  %s1426_s0 = inlined_call_operand.hbm [shape: bf16[512,128], index: 0, kind: input, shape index: {}]   ;;  %s1427_s1 = inlined_call_operand.hbm [shape: bf16[128,128], index: 1, kind: input, shape index: {}]   ;;  %s1428_s2 = inlined_call_operand.hbm [shape: f32[1,128], index: 2, kind: output, shape index: {0}]   ;;  %s1429_s3 = inlined_call_operand.hbm [shape: f32[1,128], index: 3, kind: output, shape index: {1}]  }
   0x1   :  { %11 = vsyncpa [#allocation3 + $0x1], 0 }
   0x2   :  { %12 = vsyncpa [#allocation6], 0 }
   0x3   :  { %13 = vsyncpa [#allocation4], 0 }
   0x4   :  { %14 = vsyncpa [#allocation9], 0  ;;  %s1159_s12 = smov 0   ;;  %s1161_s13 = smov 0  }
   0x5   :  { %s1163_s14 = smov 0   ;;  %s1165_s15 = smov 0  }
   0x6 LB: > { %s1178_s16 = sadd.s32 4294967295, %s1130_s15   ;;  %p40_p0 = scmp.ne.s32.totalorder %s1122_s13, %s1118_s12  ;;  %s1130_s15 = sphi %s1165_s15, %s1445_s15   ;;  %s1126_s14 = sphi %s1163_s14, %s1444_s14   ;;  %s1122_s13 = sphi %s1161_s13, %s1443_s13   ;;  %s1118_s12 = sphi %s1159_s12, %s1442_s12  }
   0x7   : > { %p1430_p1 = scmp.eq.s32.totalorder %s1178_s16, 0  ;;  %p754_p2 = scmp.ge.s32.totalorder %s1130_s15, 1 }
   0x8   : > { %p114_p3 = scmp.lt.s32.totalorder %s1130_s15, 3  ;;  %s1132_s19 = smov [#allocation5]  }
   0x9   : > { %p1187_p5 = por %p1430_p1, %p40_p0  ;;  %s126_s20 = sshll.u32 %s1132_s19, 4  ;;  %s127_s20 = int_to_ptr.vmem [resolvable:$true] %s126_s20 }
   0xa   : > { %p1191_p6 = pnand %p754_p2, %p114_p3  ;;  %s1204_s22 = sadd.s32 1, %s1130_s15  }
   0xb   : > { %s1433_s17 = scalar_select %p1187_p5, 1, 0 }
   0xc   : > { %s1434_s18 = scalar_select %p1191_p6, 1, 0 }
   0xd   : > { %p897_p7 = pneg %p1191_p6  ;;  %s27_s23 = sadd.s32 1, %s1126_s14 }
   0xe   : > { %s24_s24 = ssub.s32 %s1130_s15, %s1204_s22  ;;  %s974_s27 = scalar_lea.hbm %s1427_s1, 1024 }
   0xf   : > { %p1199_p8 = pnand %p897_p7, %p1430_p1  ;;  %p975_p9 = scmp.ne.s32.totalorder %s1427_s1, %s974_s27 }
  0x10   : > { %p981_p13 = scmp.lt.u32.totalorder %s974_s27, %s1427_s1 }
  0x11   : > { %p976_p10 = pneg %p1199_p8 }
  0x13   : > { %p977_p11 = pnand %p976_p10, %p975_p9 }
  0x15   : > { %p978_p12 = pneg %p977_p11 }
  0x17   : > { %p983_p0 = pnand %p981_p13, %p978_p12 }
  0x19   : > { %986 = shalt.err (!%p983_p0)
}
  0x1a   : > { %s987_s5 = scalar_lea.vmem %s127_s20, 1024  ;;  %p995_p4 = scmp.lt.s32.totalorder %s127_s20, %s127_s20 }
  0x1b   : > { %p988_p2 = scmp.ne.s32.totalorder %s127_s20, %s987_s5  ;;  %p996_p1 = scmp.lt.s32.totalorder %s987_s5, %s987_s5 }
  0x1d   : > { %p990_p3 = pnand %p988_p2, %p976_p10  ;;  %p997_p5 = por %p996_p1, %p995_p4 }
  0x1f   : > { %p991_p7 = pneg %p990_p3 }
  0x21   : > { %p998_p6 = pnand %p997_p5, %p991_p7 }
  0x23   : > { %1001 = shalt.err (!%p998_p6)
}
  0x24   : > { %s1133_s6 = smov 64   ;;  %s1134_s7 = smov 4  }
  0x25   : > { %900 = dma.hbm_to_vmem [thread:$0]  (!%p1199_p8), %s1427_s1, 1024, %s127_s20, [#allocation6], %s1133_s6, %s1133_s6, %s1134_s7  }
  0x26   : > { %p25_p1 = scmp.eq.s32.totalorder %s24_s24, 0  ;;  %p34_p4 = scmp.ne.s32.totalorder %s1126_s14, %s1122_s13 }
  0x27   : > { %p35_p5 = scmp.eq.s32.totalorder %s1130_s15, 0  ;;  %p906_p6 = scmp.lt.s32.totalorder %s1130_s15, 2 }
  0x28   : > { %s1233_s10 = scalar_select %p25_p1, %s1126_s14, %s27_s23  }
  0x29   : > { %p36_p9 = por %p35_p5, %p34_p4  ;;  %s140_s11 = sand.u32 1, %s1126_s14  }
  0x2a   : > { %s757_s12 = sshll.u32 %s140_s11, 7  ;;  %s794_s19 = sshll.u32 %s1130_s15, 11 }
  0x2b   : > { %s1240_s21 = scalar_lea.hbm %s1426_s0, %s794_s19  ;;  %s144_s20 = scalar_lea.vmem [#allocation2], %s757_s12 }
  0x2c   : > { %s151_s24 = sshll.u32 %s144_s20, 4  ;;  %p1244_p8 = pnand %p906_p6, %p36_p9  ;;  %s1242_s24 = int_to_ptr.vmem [resolvable:$true] %s151_s24 }
  0x2d   : > { %s1248_s15 = scalar_lea.sflag [#allocation3], %s140_s11  ;;  %s1002_s27 = scalar_lea.hbm %s1240_s21, 2048 }
  0x2e   : > { %p1003_p10 = scmp.ne.s32.totalorder %s1240_s21, %s1002_s27  ;;  %p1004_p11 = pneg %p1244_p8 }
  0x2f   : > { %s1007_s30 = scalar_lea.hbm %s1426_s0, 4096  ;;  %p1008_p0 = scmp.lt.u32.totalorder %s1240_s21, %s1426_s0 }
  0x30   : > { %p1005_p12 = pnand %p1004_p11, %p1003_p10  ;;  %p1009_p2 = scmp.lt.u32.totalorder %s1007_s30, %s1002_s27 }
  0x31   : > { %p1011_p7 = scmp.lt.u32.totalorder %s1002_s27, %s1240_s21 }
  0x32   : > { %p1006_p13 = pneg %p1005_p12  ;;  %p1010_p3 = por %p1009_p2, %p1008_p0 }
  0x34   : > { %p1012_p1 = por %p1011_p7, %p1010_p3 }
  0x36   : > { %p1013_p4 = pnand %p1012_p1, %p1006_p13 }
  0x38   : > { %1016 = shalt.err (!%p1013_p4)
}
  0x39   : > { %s1017_s8 = scalar_lea.vmem %s1242_s24, 2048  ;;  %s1135_s9 = smov [#allocation2]  }
  0x3a   : > { %p1018_p5 = scmp.ne.s32.totalorder %s1242_s24, %s1017_s8  ;;  %s1022_s11 = sshll.u32 %s1135_s9, 4  ;;  %s1023_s11 = int_to_ptr.vmem [resolvable:$false] %s1022_s11 }
  0x3b   : > { %s1024_s12 = scalar_lea.vmem %s1023_s11, 4096  ;;  %p1025_p10 = scmp.lt.s32.totalorder %s1242_s24, %s1023_s11 }
  0x3c   : > { %p1020_p6 = pnand %p1018_p5, %p1004_p11  ;;  %p1026_p12 = scmp.lt.s32.totalorder %s1024_s12, %s1017_s8 }
  0x3e   : > { %p1021_p9 = pneg %p1020_p6  ;;  %p1027_p0 = por %p1026_p12, %p1025_p10 }
  0x40   : > { %p1028_p2 = pnand %p1027_p0, %p1021_p9 }
  0x42   : > { %1031 = shalt.err (!%p1028_p2)
}
  0x43   : > { %904 = dma.hbm_to_vmem [thread:$0]  (!%p1244_p8), %s1240_s21, 2048, %s1242_s24, %s1248_s15, %s1133_s6, %s1133_s6, %s1134_s7  }
  0x44   : > { %p1437_p11 = scmp.ne.s32.totalorder %s1434_s18, 0 }
  0x45   : > { %s165_s19 = sand.u32 (!%p1437_p11), 1, %s1122_s13   ;;  %p1438_p13 = scmp.ne.s32.totalorder (!%p1437_p11), %s1433_s17, 0 }
  0x46   : > { %163 = sbr.rel (%p1437_p11) target bundleno = 452 (0x1c4), region = 28  ;;  %s761_s25 = sshll.u32 (!%p1437_p11), %s165_s19, 7 }
  0x47   : > { %s166_s26 = scalar_lea.sflag (!%p1437_p11), [#allocation3], %s165_s19  ;;  %s1282_s20 = scalar_lea.vmem (!%p1437_p11), [#allocation2], %s761_s25 }
  0x4d   : > { %1101 = dma.done.wait (%p1438_p13), %s166_s26, 2048  }
  0x4e   : > { %1103 = vsyncadd (%p1438_p13), %s166_s26, 4294965248  ;;  %p1439_p3 = scmp.eq.s32.totalorder %s1178_s16, 0 }
  0x50   : > { %1105 = dma.done.wait (%p1439_p3), [#allocation6], 1024   ;;  %p1440_p8 = pmov %p1439_p3 }
  0x51   : > { %p1441_p7 = scmp.ne.s32.totalorder %s1178_s16, 0 }
  0x52   : > { %1107 = vsyncadd (%p1440_p8), [#allocation6], 4294966272  ;;  %v1136_v0 = vmov (!%p1441_p7), 0.0  }
  0x53   : > { %196 = sbr.rel (%p1441_p7) target bundleno = 90 (0x5a), region = 40  ;;  %197 = vst [vmem:[#allocation7] sm:$0x1] (!%p1441_p7), %v1136_v0  ;;  %198 = vst [vmem:[#allocation8] sm:$0x1] (!%p1441_p7), %v1136_v0 }
  0x5a PF: > { %v950_v1 = vld [vmem:[#allocation5] sm:$0xff]   ;;  %v951_v2 = vld [vmem:[#allocation5 + $0x8] sm:$0xff]   ;;  %v952_v3 = vld [vmem:[#allocation5 + $0x10] sm:$0xff]   ;;  %s1137_s17 = smov [#allocation7]   ;;  %p908_p1 = scmp.eq.s32.totalorder %s1178_s16, 1 }
  0x5b   : > { %819 = vmatprep.subr.bf16.mxu0 %v950_v1  ;;  %867 = vmatprep.subr.bf16.mxu1 %v950_v1  ;;  %v953_v4 = vld [vmem:[#allocation5 + $0x18] sm:$0xff]   ;;  %v958_v5 = vld [vmem:[%s1282_s20] sm:$0xff]   ;;  %v955_v7 = vld [vmem:[#allocation5 + $0x28] sm:$0xff]   ;;  %s671_s18 = sshll.u32 %s1137_s17, 4  ;;  %s1138_s6 = smov [#allocation8]   ;;  %s672_s18 = int_to_ptr.vmem [resolvable:$true] %s671_s18 }
  0x5c   : > { %820 = vmatpush3.bf16.msra.mxu0 %v950_v1  ;;  %875 = vmatpush3.bf16.msra.mxu1 %v950_v1  ;;  %v954_v6 = vld [vmem:[#allocation5 + $0x20] sm:$0xff]   ;;  %v956_v9 = vld [vmem:[#allocation5 + $0x30] sm:$0xff]   ;;  %v957_v10 = vld [vmem:[#allocation5 + $0x38] sm:$0xff]   ;;  %s682_s7 = sshll.u32 %s1138_s6, 4  ;;  %s1032_s21 = scalar_lea.vmem %s672_s18, 16  ;;  %s1361_s7 = int_to_ptr.vmem [resolvable:$true] %s682_s7 }
  0x5d   : > { %821 = vmatprep.subr.bf16.mxu0 %v951_v2  ;;  %868 = vmatprep.subr.bf16.mxu1 %v951_v2  ;;  %v966_v8 = vld [vmem:[%s1282_s20 + $0x40] sm:$0xff]   ;;  %v959_v11 = vld [vmem:[%s1282_s20 + $0x8] sm:$0xff]   ;;  %v960_v13 = vld [vmem:[%s1282_s20 + $0x10] sm:$0xff]   ;;  %p1033_p4 = scmp.ne.s32.totalorder %s672_s18, %s1032_s21  ;;  %s1038_s24 = scalar_lea.vmem %s672_s18, 32 }
  0x5e   : > { %835 = vmatprep.mubr.bf16.mxu0 %v958_v5  ;;  %851 = vmatprep.mubr.bf16.mxu1 %v966_v8  ;;  %v967_v12 = vld [vmem:[%s1282_s20 + $0x48] sm:$0xff]   ;;  %v968_v14 = vld [vmem:[%s1282_s20 + $0x50] sm:$0xff]   ;;  %v961_v15 = vld [vmem:[%s1282_s20 + $0x18] sm:$0xff]   ;;  %p1039_p9 = scmp.lt.s32.totalorder %s672_s18, %s672_s18  ;;  %p1040_p10 = scmp.lt.s32.totalorder %s1038_s24, %s1032_s21 }
  0x5f   : > { %v969_v16 = vld [vmem:[%s1282_s20 + $0x58] sm:$0xff]   ;;  %v962_v17 = vld [vmem:[%s1282_s20 + $0x20] sm:$0xff]   ;;  %v963_v19 = vld [vmem:[%s1282_s20 + $0x28] sm:$0xff]   ;;  %p1034_p5 = pnand %p1033_p4, %p908_p1 }
  0x60   : > { %822 = vmatpush3.bf16.msra.mxu0 %v951_v2  ;;  %876 = vmatpush3.bf16.msra.mxu1 %v951_v2  ;;  %v970_v18 = vld [vmem:[%s1282_s20 + $0x60] sm:$0xff]   ;;  %v971_v20 = vld [vmem:[%s1282_s20 + $0x68] sm:$0xff]   ;;  %v964_v21 = vld [vmem:[%s1282_s20 + $0x30] sm:$0xff]   ;;  %p1041_p12 = por %p1040_p10, %p1039_p9 }
  0x61   : > { %823 = vmatprep.subr.bf16.mxu0 %v952_v3  ;;  %869 = vmatprep.subr.bf16.mxu1 %v952_v3  ;;  %v972_v22 = vld [vmem:[%s1282_s20 + $0x70] sm:$0xff]   ;;  %v965_v23 = vld [vmem:[%s1282_s20 + $0x38] sm:$0xff]   ;;  %p1035_p6 = pneg %p1034_p5 }
  0x62   : > { %v973_v24 = vld [vmem:[%s1282_s20 + $0x78] sm:$0xff]  }
  0x63   : > { %p1042_p0 = pnand %p1041_p12, %p1035_p6 }
  0x64   : > { %824 = vmatpush3.bf16.msra.mxu0 %v952_v3  ;;  %877 = vmatpush3.bf16.msra.mxu1 %v952_v3 }
  0x65   : > { %825 = vmatprep.subr.bf16.mxu0 %v953_v4  ;;  %870 = vmatprep.subr.bf16.mxu1 %v953_v4 }
  0x68   : > { %826 = vmatpush3.bf16.msra.mxu0 %v953_v4  ;;  %878 = vmatpush3.bf16.msra.mxu1 %v953_v4 }
  0x69   : > { %827 = vmatprep.subr.bf16.mxu0 %v954_v6  ;;  %871 = vmatprep.subr.bf16.mxu1 %v954_v6 }
  0x6c   : > { %828 = vmatpush3.bf16.msra.mxu0 %v954_v6  ;;  %879 = vmatpush3.bf16.msra.mxu1 %v954_v6 }
  0x6d   : > { %829 = vmatprep.subr.bf16.mxu0 %v955_v7  ;;  %872 = vmatprep.subr.bf16.mxu1 %v955_v7 }
  0x70   : > { %830 = vmatpush3.bf16.msra.mxu0 %v955_v7  ;;  %880 = vmatpush3.bf16.msra.mxu1 %v955_v7 }
  0x71   : > { %831 = vmatprep.subr.bf16.mxu0 %v956_v9  ;;  %873 = vmatprep.subr.bf16.mxu1 %v956_v9 }
  0x74   : > { %832 = vmatpush3.bf16.msra.mxu0 %v956_v9  ;;  %881 = vmatpush3.bf16.msra.mxu1 %v956_v9 }
  0x75   : > { %833 = vmatprep.subr.bf16.mxu0 %v957_v10  ;;  %874 = vmatprep.subr.bf16.mxu1 %v957_v10 }
  0x78   : > { %834 = vmatpush3.bf16.msra.mxu0 %v957_v10  ;;  %882 = vmatpush3.bf16.msra.mxu1 %v957_v10 }
  0x7b   : > { %836 = vmatmul.mubr.bf16.vlgmr.msra.gmra.mrb[0].mxu0 %v959_v11  ;;  %852 = vmatmul.mubr.bf16.vlgmr.msra.gmra.mrb[0].mxu1 %v967_v12 }
  0x7c   : > { %839 = vmatprep.mubr.bf16.mxu0 %v960_v13  ;;  %855 = vmatprep.mubr.bf16.mxu1 %v968_v14 }
  0x83   : > { %840 = vmatmul.mubr.bf16.gmra.mrb[4].mxu0 %v961_v15  ;;  %856 = vmatmul.mubr.bf16.gmra.mrb[4].mxu1 %v969_v16 }
  0x84   : > { %843 = vmatprep.mubr.bf16.mxu0 %v962_v17  ;;  %859 = vmatprep.mubr.bf16.mxu1 %v970_v18 }
  0x8b   : > { %844 = vmatmul.mubr.bf16.gmra.mrb[8].mxu0 %v963_v19  ;;  %860 = vmatmul.mubr.bf16.gmra.mrb[8].mxu1 %v971_v20 }
  0x8c   : > { %847 = vmatprep.mubr.bf16.mxu0 %v964_v21  ;;  %863 = vmatprep.mubr.bf16.mxu1 %v972_v22 }
  0x93   : > { %848 = vmatmul.mubr.bf16.gmra.mrb[12].mxu0 %v965_v23  ;;  %864 = vmatmul.mubr.bf16.gmra.mrb[12].mxu1 %v973_v24 }
 0x14e   : > { %v837_v25 = vpop.f32.mrb[0].mxu0  ;;  %v1310_v26 = vpop.f32.mrb[0].mxu1 }
 0x14f   : > { %v425_v27 = vpop.f32.mrb[1].mxu0  ;;  %v1312_v28 = vpop.f32.mrb[1].mxu1  ;;  %v595_v36 = vmul.f32 %v837_v25, %v837_v25 }
 0x150   : > { %v838_v29 = vpop.f32.mrb[2].mxu0  ;;  %v1314_v30 = vpop.f32.mrb[2].mxu1  ;;  %v593_v33 = vmul.f32 %v425_v27, %v425_v27 }
 0x151   : > { %v428_v31 = vpop.f32.mrb[3].mxu0  ;;  %v1316_v32 = vpop.f32.mrb[3].mxu1  ;;  %v596_v39 = vmul.f32 %v838_v29, %v838_v29 }
 0x152   : > { %v553_v34 = vadd.f32 %v428_v31, %v425_v27  ;;  %v594_v35 = vmul.f32 %v428_v31, %v428_v31 }
 0x154   : > { %v554_v37 = vadd.f32 %v837_v25, %v553_v34  ;;  %v625_v38 = vadd.f32 %v594_v35, %v593_v33 }
 0x156   : > { %v626_v40 = vadd.f32 %v625_v38, %v595_v36  ;;  %v841_v41 = vpop.f32.mrb[4].mxu0  ;;  %v555_v42 = vadd.f32 %v838_v29, %v554_v37  ;;  %v1318_v43 = vpop.f32.mrb[4].mxu1 }
 0x157   : > { %v441_v44 = vpop.f32.mrb[5].mxu0  ;;  %v1320_v45 = vpop.f32.mrb[5].mxu1  ;;  %v599_v56 = vmul.f32 %v841_v41, %v841_v41 }
 0x158   : > { %v556_v46 = vadd.f32 %v555_v42, %v441_v44  ;;  %v597_v47 = vmul.f32 %v441_v44, %v441_v44  ;;  %v627_v48 = vadd.f32 %v626_v40, %v596_v39  ;;  %v842_v49 = vpop.f32.mrb[6].mxu0  ;;  %v1322_v50 = vpop.f32.mrb[6].mxu1  ;;  %v609_v42 = vmul.f32 %v1312_v28, %v1312_v28 }
 0x159   : > { %v444_v51 = vpop.f32.mrb[7].mxu0  ;;  %v1324_v52 = vpop.f32.mrb[7].mxu1  ;;  %v600_v59 = vmul.f32 %v842_v49, %v842_v49 }
 0x15a   : > { %v628_v53 = vadd.f32 %v627_v48, %v597_v47  ;;  %v557_v54 = vadd.f32 %v556_v46, %v444_v51  ;;  %v598_v55 = vmul.f32 %v444_v51, %v444_v51  ;;  %v611_v51 = vmul.f32 %v1310_v26, %v1310_v26 }
 0x15c   : > { %v558_v57 = vadd.f32 %v841_v41, %v557_v54  ;;  %v629_v58 = vadd.f32 %v628_v53, %v598_v55  ;;  %v612_v55 = vmul.f32 %v1314_v30, %v1314_v30 }
 0x15e   : > { %v630_v60 = vadd.f32 %v629_v58, %v599_v56  ;;  %v845_v61 = vpop.f32.mrb[8].mxu0  ;;  %v559_v62 = vadd.f32 %v842_v49, %v558_v57  ;;  %v1326_v63 = vpop.f32.mrb[8].mxu1  ;;  %v610_v49 = vmul.f32 %v1316_v32, %v1316_v32 }
 0x15f   : > { %v457_v0 = vpop.f32.mrb[9].mxu0  ;;  %v521_v1 = vpop.f32.mrb[9].mxu1  ;;  %v603_v12 = vmul.f32 %v845_v61, %v845_v61 }
 0x160   : > { %v560_v2 = vadd.f32 %v559_v62, %v457_v0  ;;  %v601_v3 = vmul.f32 %v457_v0, %v457_v0  ;;  %v631_v4 = vadd.f32 %v630_v60, %v600_v59  ;;  %v846_v5 = vpop.f32.mrb[10].mxu0  ;;  %v1328_v6 = vpop.f32.mrb[10].mxu1 }
 0x161   : > { %v460_v7 = vpop.f32.mrb[11].mxu0  ;;  %v524_v8 = vpop.f32.mrb[11].mxu1  ;;  %v604_v15 = vmul.f32 %v846_v5, %v846_v5 }
 0x162   : > { %v632_v9 = vadd.f32 %v631_v4, %v601_v3  ;;  %v561_v10 = vadd.f32 %v560_v2, %v460_v7  ;;  %v602_v11 = vmul.f32 %v460_v7, %v460_v7 }
 0x164   : > { %v562_v13 = vadd.f32 %v845_v61, %v561_v10  ;;  %v633_v14 = vadd.f32 %v632_v9, %v602_v11  ;;  %v614_v61 = vmul.f32 %v1324_v52, %v1324_v52  ;;  %v618_v10 = vmul.f32 %v524_v8, %v524_v8 }
 0x166   : > { %v634_v16 = vadd.f32 %v633_v14, %v603_v12  ;;  %v849_v17 = vpop.f32.mrb[12].mxu0  ;;  %v563_v18 = vadd.f32 %v846_v5, %v562_v13  ;;  %v865_v19 = vpop.f32.mrb[12].mxu1 }
 0x167   : > { %v473_v20 = vpop.f32.mrb[13].mxu0  ;;  %v537_v21 = vpop.f32.mrb[13].mxu1  ;;  %v607_v36 = vmul.f32 %v849_v17, %v849_v17 }
 0x168   : > { %v564_v22 = vadd.f32 %v563_v18, %v473_v20  ;;  %v605_v23 = vmul.f32 %v473_v20, %v473_v20  ;;  %v635_v24 = vadd.f32 %v634_v16, %v604_v15  ;;  %v850_v25 = vpop.f32.mrb[14].mxu0  ;;  %v866_v27 = vpop.f32.mrb[14].mxu1  ;;  %v621_v15 = vmul.f32 %v537_v21, %v537_v21 }
 0x169   : > { %v476_v29 = vpop.f32.mrb[15].mxu0  ;;  %v540_v31 = vpop.f32.mrb[15].mxu1  ;;  %v608_v39 = vmul.f32 %v850_v25, %v850_v25  ;;  %v623_v20 = vmul.f32 %v865_v19, %v865_v19 }
 0x16a   : > { %v636_v33 = vadd.f32 %v635_v24, %v605_v23  ;;  %v565_v34 = vadd.f32 %v564_v22, %v476_v29  ;;  %v606_v35 = vmul.f32 %v476_v29, %v476_v29  ;;  %v622_v18 = vmul.f32 %v540_v31, %v540_v31 }
 0x16b   : > { %v624_v23 = vmul.f32 %v866_v27, %v866_v27 }
 0x16c   : > { %v566_v37 = vadd.f32 %v849_v17, %v565_v34  ;;  %v637_v38 = vadd.f32 %v636_v33, %v606_v35 }
 0x16e   : > { %v638_v40 = vadd.f32 %v637_v38, %v607_v36  ;;  %v567_v41 = vadd.f32 %v850_v25, %v566_v37 }
 0x170   : > { %v568_v44 = vadd.f32 %v567_v41, %v1312_v28  ;;  %v639_v46 = vadd.f32 %v638_v40, %v608_v39  ;;  %v613_v28 = vmul.f32 %v1320_v45, %v1320_v45  ;;  %v552_v39 = vld [vmem:[#allocation7] sm:$0x1] }
 0x172   : > { %v640_v47 = vadd.f32 %v639_v46, %v609_v42  ;;  %v569_v48 = vadd.f32 %v568_v44, %v1316_v32 }
 0x174   : > { %v570_v53 = vadd.f32 %v1310_v26, %v569_v48  ;;  %v641_v54 = vadd.f32 %v640_v47, %v610_v49  ;;  %v615_v26 = vmul.f32 %v1318_v43, %v1318_v43 }
 0x176   : > { %v642_v56 = vadd.f32 %v641_v54, %v611_v51  ;;  %v571_v57 = vadd.f32 %v1314_v30, %v570_v53  ;;  %v616_v30 = vmul.f32 %v1322_v50, %v1322_v50 }
 0x178   : > { %v572_v58 = vadd.f32 %v571_v57, %v1320_v45  ;;  %v643_v59 = vadd.f32 %v642_v56, %v612_v55  ;;  %v617_v45 = vmul.f32 %v521_v1, %v521_v1 }
 0x17a   : > { %v644_v60 = vadd.f32 %v643_v59, %v613_v28  ;;  %v573_v32 = vadd.f32 %v572_v58, %v1324_v52  ;;  %v619_v52 = vmul.f32 %v1326_v63, %v1326_v63 }
 0x17c   : > { %v574_v62 = vadd.f32 %v1318_v43, %v573_v32  ;;  %v645_v0 = vadd.f32 %v644_v60, %v614_v61  ;;  %v620_v43 = vmul.f32 %v1328_v6, %v1328_v6 }
 0x17e   : > { %v646_v2 = vadd.f32 %v645_v0, %v615_v26  ;;  %v575_v3 = vadd.f32 %v1322_v50, %v574_v62 }
 0x180   : > { %v576_v4 = vadd.f32 %v575_v3, %v521_v1  ;;  %v647_v5 = vadd.f32 %v646_v2, %v616_v30 }
 0x182   : > { %v648_v7 = vadd.f32 %v647_v5, %v617_v45  ;;  %v577_v9 = vadd.f32 %v576_v4, %v524_v8 }
 0x184   : > { %v578_v11 = vadd.f32 %v1326_v63, %v577_v9  ;;  %v649_v12 = vadd.f32 %v648_v7, %v618_v10 }
 0x186   : > { %v650_v13 = vadd.f32 %v649_v12, %v619_v52  ;;  %v579_v14 = vadd.f32 %v1328_v6, %v578_v11 }
 0x188   : > { %v580_v50 = vadd.f32 %v579_v14, %v537_v21  ;;  %v651_v16 = vadd.f32 %v650_v13, %v620_v43 }
 0x18a   : > { %v652_v1 = vadd.f32 %v651_v16, %v621_v15  ;;  %v581_v17 = vadd.f32 %v580_v50, %v540_v31 }
 0x18c   : > { %v582_v8 = vadd.f32 %v865_v19, %v581_v17  ;;  %v653_v22 = vadd.f32 %v652_v1, %v622_v18 }
 0x18e   : > { %v583_v24 = vadd.f32 %v866_v27, %v582_v8  ;;  %v654_v25 = vadd.f32 %v653_v22, %v623_v20  ;;  %v592_v27 = vld [vmem:[#allocation8] sm:$0x1] }
 0x190   : > { %v584_v63 = vrot.slane %v583_v24, 4  ;;  %v655_v29 = vadd.f32 %v654_v25, %v624_v23 }
 0x192   : > { %v585_v33 = vadd.f32 %v584_v63, %v583_v24  ;;  %v656_v34 = vrot.slane %v655_v29, 4 }
 0x194   : > { %v586_v35 = vrot.slane %v585_v33, 2  ;;  %v657_v36 = vadd.f32 %v656_v34, %v655_v29 }
 0x196   : > { %v587_v6 = vadd.f32 %v586_v35, %v585_v33  ;;  %v658_v37 = vrot.slane %v657_v36, 2 }
 0x198   : > { %v588_v21 = vrot.slane %v587_v6, 1  ;;  %v659_v38 = vadd.f32 %v658_v37, %v657_v36 }
 0x19a   : > { %v589_v19 = vadd.f32 %v588_v21, %v587_v6  ;;  %v660_v31 = vrot.slane %v659_v38, 1 }
 0x19c   : > { %v590_v40 = vadd.f32 %v589_v19, %v552_v39  ;;  %v661_v41 = vadd.f32 %v660_v31, %v659_v38 }
 0x19e   : > { %591 = vst [vmem:[#allocation7] sm:$0x1] %v590_v40  ;;  %v662_v42 = vadd.f32 %v661_v41, %v592_v27 }
 0x19f   : > { %1045 = shalt.err (!%p1042_p0)
}
 0x1a0   : > { %s1046_s27 = scalar_lea.hbm %s1428_s2, 16 }
 0x1a1   : > { %p1047_p2 = scmp.ne.s32.totalorder %s1428_s2, %s1046_s27  ;;  %p1052_p3 = scmp.lt.u32.totalorder %s1046_s27, %s1428_s2 }
 0x1a3   : > { %p1048_p11 = pnand %p1047_p2, %p908_p1 }
 0x1a5   : > { %p1049_p13 = pneg %p1048_p11 }
 0x1a7   : > { %p1054_p8 = pnand %p1052_p3, %p1049_p13 }
 0x1a9   : > { %1057 = shalt.err (!%p1054_p8)
}
 0x1aa   : > { %890 = dma.vmem_to_hbm [thread:$0]  (%p908_p1), %s672_s18, 16, %s1428_s2, [#allocation4]   ;;  %663 = vst [vmem:[#allocation8] sm:$0x1] %v662_v42 }
 0x1ab   : > { %s1058_s9 = scalar_lea.vmem %s1361_s7, 16  ;;  %s1064_s11 = scalar_lea.vmem %s1361_s7, 32 }
 0x1ac   : > { %p1059_p7 = scmp.ne.s32.totalorder %s1361_s7, %s1058_s9  ;;  %p1065_p6 = scmp.lt.s32.totalorder %s1361_s7, %s1361_s7 }
 0x1ad   : > { %p1066_p9 = scmp.lt.s32.totalorder %s1064_s11, %s1058_s9 }
 0x1ae   : > { %p1060_p4 = pnand %p1059_p7, %p908_p1 }
 0x1af   : > { %p1067_p10 = por %p1066_p9, %p1065_p6 }
 0x1b0   : > { %p1061_p5 = pneg %p1060_p4 }
 0x1b2   : > { %p1068_p12 = pnand %p1067_p10, %p1061_p5 }
 0x1b4   : > { %1071 = shalt.err (!%p1068_p12)
}
 0x1b5   : > { %s1072_s25 = scalar_lea.hbm %s1429_s3, 16 }
 0x1b6   : > { %p1073_p0 = scmp.ne.s32.totalorder %s1429_s3, %s1072_s25  ;;  %p1078_p13 = scmp.lt.u32.totalorder %s1072_s25, %s1429_s3 }
 0x1b8   : > { %p1074_p2 = pnand %p1073_p0, %p908_p1 }
 0x1ba   : > { %p1075_p11 = pneg %p1074_p2 }
 0x1bc   : > { %p1080_p3 = pnand %p1078_p13, %p1075_p11 }
 0x1be   : > { %1083 = shalt.err (!%p1080_p3)
}
 0x1bf   : > { %892 = dma.vmem_to_hbm [thread:$0]  (%p908_p1), %s1361_s7, 16, %s1429_s3, [#allocation9]  }
 0x1c0   : > { %1109 = dma.done.wait (%p908_p1), [#allocation4], 16  }
 0x1c1   : > { %1111 = vsyncadd (%p908_p1), [#allocation4], 4294967280 }
 0x1c2   : > { %1113 = dma.done.wait (%p908_p1), [#allocation9], 16  }
 0x1c3   : > { %1115 = vsyncadd (%p908_p1), [#allocation9], 4294967280 }
 0x1c4 PF: > { %p17_p8 = scmp.ge.s32.totalorder %s1204_s22, 4   ;;  %s1442_s12 = smov %s1122_s13 }
 0x1c5   : > { %s1443_s13 = smov %s1126_s14  ;;  %s1444_s14 = smov %s1233_s10 }
 0x1c6   : > { %s1445_s15 = smov %s1204_s22  ;;  %19 = sbr.rel (!%p17_p8) target bundleno = 6 (0x6), region = 81 }
 0x1cd   :  { %699 = vsyncpa [#allocation3], 1 }
 0x1ce   :  { %701 = vsyncpa [#allocation3 + $0x1], 1 }
 0x1cf   :  { %702 = vsyncpa [#allocation6], 1 }
 0x1d0   :  { %703 = vsyncpa [#allocation4], 1 }
 0x1d1   :  { %705 = vsyncpa [#allocation4 + $0x1], 1 }
 0x1d2   :  { %706 = vsyncpa [#allocation9], 1 }

</bundles_post_ra>
